<compile_context>
chip_gen: v7x
topology: tpu7x:2x2x1
jax: 0.10.0
libtpu: 0.0.40
codegen_flags: <defaults>
</compile_context>

<pallas_src>
import math

import jax
import jax.numpy as jnp
from jax import lax
from jax.experimental import pallas as pl
from jax.experimental.pallas import tpu as pltpu


# x:(tm,tk) . w:(tn,tk) contracted on their last dims -> (tm,tn)  (i.e. x @ w.T)
_CONTRACT_LAST = (((1,), (1,)), ((), ()))


def _sigmoid(z):
    # tanh-based sigmoid: tanh uses the EUP slot, mul/add the VPU; avoids the
    # full-precision divide that previously landed on the (binding) VPU.
    return 0.5 * jnp.tanh(0.5 * z) + 0.5


# --------------------------------------------------------------------------
# Kernels
# --------------------------------------------------------------------------
def _kernel_single_k(x_ref, w_ref, b_ref, o_ref):
    # Whole reduction in one step: no accumulator scratch needed.
    z = lax.dot_general(x_ref[...], w_ref[...], _CONTRACT_LAST,
                        preferred_element_type=jnp.float32)
    z = z + b_ref[...]
    o_ref[...] = _sigmoid(z).astype(o_ref.dtype)


def _kernel_multi_k(x_ref, w_ref, b_ref, o_ref, acc_ref):
    @pl.when(pl.program_id(2) == 0)
    def _init():
        acc_ref[...] = jnp.zeros_like(acc_ref)

    acc_ref[...] += lax.dot_general(x_ref[...], w_ref[...], _CONTRACT_LAST,
                                    preferred_element_type=jnp.float32)

    @pl.when(pl.program_id(2) == pl.num_programs(2) - 1)
    def _finalize():
        z = acc_ref[...] + b_ref[...]
        o_ref[...] = _sigmoid(z).astype(o_ref.dtype)


# --------------------------------------------------------------------------
# Wrapper
# --------------------------------------------------------------------------
def linear_sigmoid(x, w, b, *, tm_max=512, tn_max=256, tk_max=1024):
    """sigmoid(x @ w.T + b) in one fused Pallas TPU kernel.

    x: (M, K) float32
    w: (N, K) float32   (PyTorch nn.Linear weight layout: (out, in))
    b: (N,)   float32
    returns (M, N) float32

    tm_max must be a multiple of 8; tn_max/tk_max multiples of 128.
    """
    M, K = x.shape
    N, Kw = w.shape
    assert K == Kw, (K, Kw)

    x = x.astype(jnp.float32)
    w = w.astype(jnp.float32)
    b2 = b.astype(jnp.float32).reshape(1, N)

    # --- tile selection ----------------------------------------------------
    # M: never padded; a ragged last block is masked on store.
    tm = M if M <= tm_max else tm_max
    # N: never padded; garbage rows of a ragged W/bias block only feed output
    #    columns that are masked on store.
    tn = N if N <= tn_max else tn_max
    # K: the reduction axis must NOT be ragged (stale VMEM would contaminate
    #    valid outputs), so zero-pad K only if it has to be split.
    if K <= tk_max:
        tk, Kp = K, K
    else:
        tk = tk_max
        Kp = pl.cdiv(K, tk) * tk
        if Kp != K:
            x = jnp.pad(x, ((0, 0), (0, Kp - K)))
            w = jnp.pad(w, ((0, 0), (0, Kp - K)))

    gm, gn, gk = pl.cdiv(M, tm), pl.cdiv(N, tn), Kp // tk
    out_shape = jax.ShapeDtypeStruct((M, N), jnp.float32)
    vmem_limit = 48 * 1024 * 1024   # safe on v7x (64 MiB), ample on v5e/v6e

    if gk == 1:
        return pl.pallas_call(
            _kernel_single_k,
            out_shape=out_shape,
            grid_spec=pltpu.PrefetchScalarGridSpec(
                num_scalar_prefetch=0,
                grid=(gm, gn),
                in_specs=[
                    pl.BlockSpec((tm, tk), lambda i, j: (i, 0)),
                    pl.BlockSpec((tn, tk), lambda i, j: (j, 0)),
                    pl.BlockSpec((1, tn), lambda i, j: (0, j)),
                ],
                out_specs=pl.BlockSpec((tm, tn), lambda i, j: (i, j)),
            ),
            compiler_params=pltpu.CompilerParams(
                dimension_semantics=("parallel", "parallel"),
                vmem_limit_bytes=vmem_limit),
        )(x, w, b2)

    return pl.pallas_call(
        _kernel_multi_k,
        out_shape=out_shape,
        grid_spec=pltpu.PrefetchScalarGridSpec(
            num_scalar_prefetch=0,
            grid=(gm, gn, gk),
            in_specs=[
                pl.BlockSpec((tm, tk), lambda i, j, k: (i, k)),
                pl.BlockSpec((tn, tk), lambda i, j, k: (j, k)),
                pl.BlockSpec((1, tn), lambda i, j, k: (0, j)),
            ],
            out_specs=pl.BlockSpec((tm, tn), lambda i, j, k: (i, j)),
            scratch_shapes=[pltpu.VMEM((tm, tn), jnp.float32)],
        ),
        compiler_params=pltpu.CompilerParams(
            dimension_semantics=("parallel", "parallel", "arbitrary"),
            vmem_limit_bytes=vmem_limit),
    )(x, w, b2)


# --------------------------------------------------------------------------
# EvenGenerator forward
# --------------------------------------------------------------------------
def even_generator_forward(x, params):
    """x: (batch, input_length) -> sigmoid(Linear(x)), PyTorch semantics."""
    return linear_sigmoid(x, params["w"], params["b"])


# --------------------------------------------------------------------------
# Deterministic examples + self-checks
# --------------------------------------------------------------------------
def _make_params(key, input_length):
    k_w, k_b = jax.random.split(key)
    bound = 1.0 / math.sqrt(input_length)   # PyTorch nn.Linear default init
    return {
        "w": jax.random.uniform(k_w, (input_length, input_length),
                                jnp.float32, -bound, bound),
        "b": jax.random.uniform(k_b, (input_length,),
                                jnp.float32, -bound, bound),
    }


def _check(out, x, params, shape):
    ref = jax.nn.sigmoid(x @ params["w"].T + params["b"])
    assert out.shape == shape, out.shape
    assert out.dtype == jnp.float32
    assert bool(jnp.all(jnp.isfinite(out)))
    assert bool(jnp.allclose(out, ref, atol=1e-5, rtol=1e-5)), \
        float(jnp.max(jnp.abs(out - ref)))


if __name__ == "__main__":
    key = jax.random.PRNGKey(0)
    k0, k1, k2, kp0, kp1, kp2 = jax.random.split(key, 6)

    # 1) Lane-aligned case (batch=16, input_length=128): single fused call,
    #    no pads, no transpose, no slice.
    batch, L = 16, 128
    x = jax.random.normal(k0, (batch, L), jnp.float32)
    params = _make_params(kp0, L)
    fwd = jax.jit(even_generator_forward)
    out = jax.block_until_ready(fwd(x, params))
    _check(out, x, params, (batch, L))

    # 2) Tiny odd layer (classic even-number-GAN size): full-dim blocks.
    batch2, L2 = 16, 7
    x2 = jax.random.normal(k1, (batch2, L2), jnp.float32)
    params2 = _make_params(kp1, L2)
    out2 = jax.block_until_ready(jax.jit(even_generator_forward)(x2, params2))
    _check(out2, x2, params2, (batch2, L2))

    # 3) Multi-block path: forces M/N/K tiling, ragged M and N blocks,
    #    zero-padded split K, and the accumulator kernel.
    batch3, L3 = 20, 200
    x3 = jax.random.normal(k2, (batch3, L3), jnp.float32)
    params3 = _make_params(kp2, L3)
    out3 = jax.block_until_ready(
        jax.jit(lambda xx, pp: linear_sigmoid(xx, pp["w"], pp["b"],
                                              tm_max=8, tn_max=128,
                                              tk_max=128))(x3, params3))
    _check(out3, x3, params3, (batch3, L3))

    print("KERNEL_OK")
</pallas_src>

<mosaic_0001>
module attributes {stable_mosaic.version = 11 : i64} {
  func.func @_kernel_single_k(%arg0: i32, %arg1: i32, %arg2: memref<16x128xf32, #tpu.memory_space<vmem>>, %arg3: memref<128x128xf32, #tpu.memory_space<vmem>>, %arg4: memref<1x128xf32, #tpu.memory_space<vmem>>, %arg5: memref<16x128xf32, #tpu.memory_space<vmem>>) attributes {dimension_semantics = [#tpu.dimension_semantics<parallel>, #tpu.dimension_semantics<parallel>], iteration_bounds = array<i64: 1, 1>, scalar_prefetch = 0 : i64, scratch_operands = 0 : i64, tpu.core_type = #tpu.core_type<tc>, window_params = [{transform_indices = @transform_0, window_bounds = array<i64: 16, 128>}, {transform_indices = @transform_1, window_bounds = array<i64: 128, 128>}, {transform_indices = @transform_2, window_bounds = array<i64: 1, 128>}, {transform_indices = @transform_3, window_bounds = array<i64: 16, 128>}]} {
    %c0 = arith.constant 0 : index
    %c0_0 = arith.constant 0 : index
    %0 = vector.load %arg2[%c0, %c0_0] : memref<16x128xf32, #tpu.memory_space<vmem>>, vector<16x128xf32>
    %c0_1 = arith.constant 0 : index
    %c0_2 = arith.constant 0 : index
    %1 = vector.load %arg3[%c0_1, %c0_2] : memref<128x128xf32, #tpu.memory_space<vmem>>, vector<128x128xf32>
    %cst = arith.constant dense<0.000000e+00> : vector<16x128xf32>
    %2 = tpu.matmul %0, %1, %cst {dimension_numbers = #tpu.dot_dimension_numbers<[1], [1], [0], [0], [0, 0, 1, 0], [], []>} : vector<16x128xf32>, vector<128x128xf32>, vector<16x128xf32> -> vector<16x128xf32>
    %c0_3 = arith.constant 0 : index
    %c0_4 = arith.constant 0 : index
    %3 = vector.load %arg4[%c0_3, %c0_4] : memref<1x128xf32, #tpu.memory_space<vmem>>, vector<1x128xf32>
    %4 = vector.broadcast %3 : vector<1x128xf32> to vector<16x128xf32>
    %5 = arith.addf %2, %4 : vector<16x128xf32>
    %cst_5 = arith.constant 5.000000e-01 : f32
    %6 = vector.broadcast %cst_5 : f32 to vector<16x128xf32>
    %7 = arith.mulf %6, %5 : vector<16x128xf32>
    %8 = math.tanh %7 : vector<16x128xf32>
    %cst_6 = arith.constant 5.000000e-01 : f32
    %9 = vector.broadcast %cst_6 : f32 to vector<16x128xf32>
    %10 = arith.mulf %9, %8 : vector<16x128xf32>
    %cst_7 = arith.constant 5.000000e-01 : f32
    %11 = vector.broadcast %cst_7 : f32 to vector<16x128xf32>
    %12 = arith.addf %10, %11 : vector<16x128xf32>
    %c0_8 = arith.constant 0 : index
    %c0_9 = arith.constant 0 : index
    %13 = vector.load %arg5[%c0_8, %c0_9] : memref<16x128xf32, #tpu.memory_space<vmem>>, vector<16x128xf32>
    tpu.vector_store %arg5[%c0_8, %c0_9], %12 {strides = array<i32>} : memref<16x128xf32, #tpu.memory_space<vmem>>, vector<16x128xf32>,
    return
  }
  func.func @transform_0(%arg0: i32, %arg1: i32) -> (i32, i32) {
    %c0_i32 = arith.constant 0 : i32
    %c0_i32_0 = arith.constant 0 : i32
    return %arg0, %c0_i32 : i32, i32
  }
  func.func @transform_1(%arg0: i32, %arg1: i32) -> (i32, i32) {
    %c0_i32 = arith.constant 0 : i32
    %c0_i32_0 = arith.constant 0 : i32
    return %arg1, %c0_i32 : i32, i32
  }
  func.func @transform_2(%arg0: i32, %arg1: i32) -> (i32, i32) {
    %c0_i32 = arith.constant 0 : i32
    %c0_i32_0 = arith.constant 0 : i32
    return %c0_i32, %arg1 : i32, i32
  }
  func.func @transform_3(%arg0: i32, %arg1: i32) -> (i32, i32) {
    %c0_i32 = arith.constant 0 : i32
    return %arg0, %arg1 : i32, i32
  }
}

</mosaic_0001>

<bundles_post_ra>
// kernel: even_generator_forward.1
= control target key start
LH: loop header
LB: loop body
LE: loop exit
PB: predicated region body
PF: predicated region fallthrough
CT: control target
= control target key end

     0   :  { %8 = vsyncpa [#allocation3], 0  ;;  %s411_s0 = inlined_call_operand.hbm [shape: f32[16,128], index: 0, kind: input, shape index: {}]   ;;  %s412_s1 = inlined_call_operand.hbm [shape: f32[128,128], index: 1, kind: input, shape index: {}]   ;;  %s413_s2 = inlined_call_operand.vmem [shape: f32[1,128], index: 2, kind: input, shape index: {}]   ;;  %s414_s3 = inlined_call_operand.hbm [shape: f32[16,128], index: 3, kind: output, shape index: {}]  }
   0x1   :  { %9 = vsyncpa [#allocation6], 0 }
   0x2   :  { %10 = vsyncpa [#allocation4], 0  ;;  %s338_s12 = smov [#allocation2]   ;;  %s266_s16 = scalar_lea.hbm %s411_s0, 256 }
   0x3   :  { %s16_s13 = sshll.u32 %s338_s12, 4  ;;  %p267_p0 = scmp.ne.s32.totalorder %s411_s0, %s266_s16  ;;  %s17_s13 = int_to_ptr.vmem [resolvable:$true] %s16_s13 }
   0x4   :  { %p270_p1 = scmp.lt.u32.totalorder %s266_s16, %s411_s0 }
   0x6   :  { %p272_p2 = pnand %p270_p1, %p267_p0 }
   0x8   :  { %275 = shalt.err (!%p272_p2)
}
   0x9   :  { %s276_s21 = scalar_lea.vmem %s17_s13, 256  ;;  %p281_p4 = scmp.lt.s32.totalorder %s17_s13, %s17_s13 }
   0xa   :  { %p277_p3 = scmp.ne.s32.totalorder %s17_s13, %s276_s21  ;;  %p282_p5 = scmp.lt.s32.totalorder %s276_s21, %s276_s21 }
   0xc   :  { %p283_p6 = por %p282_p5, %p281_p4 }
   0xe   :  { %p284_p7 = pnand %p283_p6, %p277_p3 }
  0x10   :  { %287 = shalt.err (!%p284_p7)
}
  0x11   :  { %s339_s22 = smov 128   ;;  %s340_s23 = smov 8  }
  0x12   :  { %22 = dma.hbm_to_vmem [thread:$0]  %s411_s0, 256, %s17_s13, [#allocation3], %s339_s22, %s339_s22, %s340_s23  }
  0x13   :  { %s341_s26 = smov [#allocation5]   ;;  %s288_s30 = scalar_lea.hbm %s412_s1, 2048 }
  0x14   :  { %s28_s27 = sshll.u32 %s341_s26, 4  ;;  %p289_p8 = scmp.ne.s32.totalorder %s412_s1, %s288_s30  ;;  %s29_s27 = int_to_ptr.vmem [resolvable:$true] %s28_s27 }
  0x15   :  { %p292_p9 = scmp.lt.u32.totalorder %s288_s30, %s412_s1 }
  0x17   :  { %p294_p10 = pnand %p292_p9, %p289_p8 }
  0x19   :  { %297 = shalt.err (!%p294_p10)
}
  0x1a   :  { %s298_s8 = scalar_lea.vmem %s29_s27, 2048  ;;  %p303_p12 = scmp.lt.s32.totalorder %s29_s27, %s29_s27 }
  0x1b   :  { %p299_p11 = scmp.ne.s32.totalorder %s29_s27, %s298_s8  ;;  %p304_p13 = scmp.lt.s32.totalorder %s298_s8, %s298_s8 }
  0x1d   :  { %p305_p0 = por %p304_p13, %p303_p12 }
  0x1f   :  { %p306_p1 = pnand %p305_p0, %p299_p11 }
  0x21   :  { %309 = shalt.err (!%p306_p1)
}
  0x22   :  { %34 = dma.hbm_to_vmem [thread:$0]  %s412_s1, 2048, %s29_s27, [#allocation6], %s339_s22, %s339_s22, %s340_s23  }
  0x23   :  { %332 = dma.done.wait [#allocation3], 256  }
  0x24   :  { %333 = vsyncadd [#allocation3], 4294967040 }
  0x25   :  { %334 = dma.done.wait [#allocation6], 2048  }
  0x26   :  { %335 = vsyncadd [#allocation6], 4294965248  ;;  %v45_v0 = vld [vmem:[#allocation5] sm:$0xff]  ;;  %v46_v1 = vld [vmem:[#allocation5 + $0x8] sm:$0xff]  ;;  %s342_s11 = smov [#allocation7]  }
  0x27   :  { %v47_v2 = vld [vmem:[#allocation5 + $0x10] sm:$0xff]  ;;  %v225_v3 = vpack.c.bf16 %v46_v1, %v45_v0  ;;  %v48_v4 = vld [vmem:[#allocation5 + $0x18] sm:$0xff]  ;;  %v49_v7 = vld [vmem:[#allocation5 + $0x20] sm:$0xff]  ;;  %s158_s12 = sshll.u32 %s342_s11, 4  ;;  %s159_s12 = int_to_ptr.vmem [resolvable:$true] %s158_s12 }
  0x28   :  { %v229_v5 = vpack.c.bf16 %v48_v4, %v47_v2  ;;  %v43_v6 = vld [vmem:[#allocation2] sm:$0xff]  ;;  %v50_v8 = vld [vmem:[#allocation5 + $0x28] sm:$0xff]  ;;  %v52_v11 = vld [vmem:[#allocation5 + $0x38] sm:$0xff]  ;;  %p315_p3 = scmp.lt.s32.totalorder %s159_s12, %s159_s12 }
  0x29   :  { %226 = vmatprep.subr.bf16.mxu0 %v225_v3  ;;  %222 = vmatprep.mubr.f32.mxu0 %v43_v6  ;;  %v233_v9 = vpack.c.bf16 %v50_v8, %v49_v7  ;;  %v51_v10 = vld [vmem:[#allocation5 + $0x30] sm:$0xff]  ;;  %v53_v13 = vld [vmem:[#allocation5 + $0x40] sm:$0xff]  ;;  %v54_v14 = vld [vmem:[#allocation5 + $0x48] sm:$0xff] }
  0x2a   :  { %228 = vmatpush3.bf16.xpose.msra.mxu0 %v225_v3  ;;  %v237_v12 = vpack.c.bf16 %v52_v11, %v51_v10  ;;  %v241_v15 = vpack.c.bf16 %v54_v14, %v53_v13  ;;  %v55_v16 = vld [vmem:[#allocation5 + $0x50] sm:$0xff]  ;;  %v56_v17 = vld [vmem:[#allocation5 + $0x58] sm:$0xff]  ;;  %v57_v19 = vld [vmem:[#allocation5 + $0x60] sm:$0xff] }
  0x2b   :  { %230 = vmatprep.subr.bf16.mxu0 %v229_v5  ;;  %v245_v18 = vpack.c.bf16 %v56_v17, %v55_v16  ;;  %v58_v20 = vld [vmem:[#allocation5 + $0x68] sm:$0xff]  ;;  %v59_v22 = vld [vmem:[#allocation5 + $0x70] sm:$0xff]  ;;  %v60_v23 = vld [vmem:[#allocation5 + $0x78] sm:$0xff] }
  0x2c   :  { %v249_v21 = vpack.c.bf16 %v58_v20, %v57_v19  ;;  %v253_v24 = vpack.c.bf16 %v60_v23, %v59_v22  ;;  %v44_v25 = vld [vmem:[#allocation2 + $0x8] sm:$0xff]  ;;  %v171_v26 = vld [vmem:[%s413_s2] ss:$0 sm:$0xff]  ;;  %s310_s2 = scalar_lea.vmem %s159_s12, 256 }
  0x2d   :  { %p311_p2 = scmp.ne.s32.totalorder %s159_s12, %s310_s2  ;;  %p316_p4 = scmp.lt.s32.totalorder %s310_s2, %s310_s2 }
  0x2f   :  { %p317_p5 = por %p316_p4, %p315_p3 }
  0x31   :  { %p318_p6 = pnand %p317_p5, %p311_p2 }
  0x32   :  { %232 = vmatpush3.bf16.xpose.msra.mxu0 %v229_v5 }
  0x33   :  { %234 = vmatprep.subr.bf16.mxu0 %v233_v9 }
  0x3a   :  { %236 = vmatpush3.bf16.xpose.msra.mxu0 %v233_v9 }
  0x3b   :  { %238 = vmatprep.subr.bf16.mxu0 %v237_v12 }
  0x42   :  { %240 = vmatpush3.bf16.xpose.msra.mxu0 %v237_v12 }
  0x43   :  { %242 = vmatprep.subr.bf16.mxu0 %v241_v15 }
  0x4a   :  { %244 = vmatpush3.bf16.xpose.msra.mxu0 %v241_v15 }
  0x4b   :  { %246 = vmatprep.subr.bf16.mxu0 %v245_v18 }
  0x52   :  { %248 = vmatpush3.bf16.xpose.msra.mxu0 %v245_v18 }
  0x53   :  { %250 = vmatprep.subr.bf16.mxu0 %v249_v21 }
  0x5a   :  { %252 = vmatpush3.bf16.xpose.msra.mxu0 %v249_v21 }
  0x5b   :  { %254 = vmatprep.subr.bf16.mxu0 %v253_v24 }
  0x62   :  { %256 = vmatpush3.bf16.xpose.msra.mxu0 %v253_v24 }
  0x69   :  { %223 = vmatmul.mubr.f32.vlgmr.msra.gmra.mrb[0].mxu0 %v44_v25 }
 0x13c   :  { %v224_v27 = vpop.f32.mrb[0].mxu0 }
 0x13d   :  { %v140_v28 = vadd.f32 %v224_v27, %v171_v26  ;;  %v134_v29 = vpop.f32.mrb[1].mxu0 }
 0x13e   :  { %v135_v30 = vadd.f32 %v171_v26, %v134_v29 }
 0x13f   :  { %v144_v31 = vmul.f32 0.5, %v140_v28 }
 0x140   :  { %v143_v32 = vmul.f32 0.5, %v135_v30 }
 0x141   :  { %262 = vtanh.f32 %v144_v31 }
 0x142   :  { %264 = vtanh.f32 %v143_v32 }
 0x14b   :  { %v263_v33 = vpop.eup %262 }
 0x14c   :  { %v265_v34 = vpop.eup %264  ;;  %v148_v35 = vmul.f32 0.5, %v263_v33 }
 0x14d   :  { %v147_v36 = vmul.f32 0.5, %v265_v34 }
 0x14e   :  { %v150_v37 = vadd.f32 0.5, %v148_v35 }
 0x14f   :  { %v149_v38 = vadd.f32 0.5, %v147_v36 }
 0x150   :  { %152 = vst [vmem:[#allocation7 + $0x8] sm:$0xff] %v150_v37 }
 0x151   :  { %151 = vst [vmem:[#allocation7] sm:$0xff] %v149_v38 }
 0x152   :  { %321 = shalt.err (!%p318_p6)
}
 0x153   :  { %s322_s15 = scalar_lea.hbm %s414_s3, 256 }
 0x154   :  { %p323_p7 = scmp.ne.s32.totalorder %s414_s3, %s322_s15  ;;  %p326_p8 = scmp.lt.u32.totalorder %s322_s15, %s414_s3 }
 0x156   :  { %p328_p9 = pnand %p326_p8, %p323_p7 }
 0x158   :  { %331 = shalt.err (!%p328_p9)
}
 0x159   :  { %164 = dma.vmem_to_hbm [thread:$0]  %s159_s12, 256, %s414_s3, [#allocation4], %s339_s22, %s339_s22, %s340_s23  }
 0x15a   :  { %336 = dma.done.wait [#allocation4], 256  }
 0x15b   :  { %337 = vsyncadd [#allocation4], 4294967040 }
 0x15c   :  { %168 = vsyncpa [#allocation3], 1 }
 0x15d   :  { %169 = vsyncpa [#allocation6], 1 }
 0x15e   :  { %170 = vsyncpa [#allocation4], 1 }

</bundles_post_ra>
